<compile_context>
chip_gen: v5e
topology: v5e:2x2
jax: 0.10.0
libtpu: 0.0.40
codegen_flags: <defaults>
</compile_context>

<pallas_src>
import numpy as np
import jax
import jax.numpy as jnp
from jax.experimental import pallas as pl
from jax.experimental.pallas import tpu as pltpu


EPS = 1e-4          # Fusion.eps
LANES = 128         # TPU lane width; output last dim kept lane-dense


# ----------------------------- Pallas kernel --------------------------------

def _make_fusion_kernel(num_inputs):
    """Weighted-sum kernel over `num_inputs` same-shaped (tm, 128) tiles."""

    def kernel(*refs):
        w_ref = refs[0]                      # SMEM (num_inputs,) normalized weights
        feat_refs = refs[1:1 + num_inputs]   # VMEM (tm, LANES) tiles
        o_ref = refs[1 + num_inputs]         # VMEM (tm, LANES) output tile
        acc = feat_refs[0][...].astype(jnp.float32) * w_ref[0]
        for i in range(1, num_inputs):       # static unroll, pure VPU work
            acc = acc + feat_refs[i][...].astype(jnp.float32) * w_ref[i]
        o_ref[...] = acc.astype(o_ref.dtype)

    return kernel


# ----------------------------- tiling helpers --------------------------------

def _round_up(x, m):
    return ((x + m - 1) // m) * m


def _cdiv(a, b):
    return -(-a // b)


def _choose_row_tile(m_rows, num_streams, bytes_per_elem):
    """Pick (row_tile, grid_size).

    Row tile is either the full row count (tiny inputs, always a legal block)
    or a multiple of 8 bounded by a double-buffered VMEM budget; the grid is
    split into >= 2 blocks whenever there is enough work (v7x megacore).
    A partial boundary block is fine: the op is elementwise, so out-of-bounds
    lanes of the last block never contaminate in-bounds output.
    """
    budget = 12 * 1024 * 1024                       # conservative across v5e/v6e/v7x
    per_row = LANES * bytes_per_elem
    tm_cap = max(8, (budget // (per_row * 2 * num_streams)) // 8 * 8)
    tm_cap = min(tm_cap, 4096)

    if m_rows < 16:                                 # single block == full array dim
        return max(m_rows, 1), 1
    if m_rows <= tm_cap:                            # split in two for megacore
        tm = _round_up(_cdiv(m_rows, 2), 8)
        return tm, _cdiv(m_rows, tm)
    return tm_cap, _cdiv(m_rows, tm_cap)


# ----------------------------- weight normalization --------------------------

def _normalize_weights(weights, norm_method, eps=EPS):
    w = weights.astype(jnp.float32)
    if norm_method == "softmax":
        return jax.nn.softmax(w, axis=0)
    elif norm_method == "fast_normalize":
        w = jax.nn.relu(w)
        return w / (jnp.sum(w, axis=0) + eps)
    raise NotImplementedError(f"{norm_method} is not supported for feature fusion.")


# ----------------------------- forward ---------------------------------------

def fusion_forward(features, weights, norm_method="fast_normalize"):
    """Pallas implementation of Fusion.forward.

    features: list of arrays, all the same shape (e.g. NCHW feature maps).
    weights:  (num_inputs,) raw fusion weights (the nn.Parameter).
    """
    num_inputs = len(features)
    assert num_inputs > 1
    shape = features[0].shape
    dtype = features[0].dtype
    for f in features:
        assert f.shape == shape and f.dtype == dtype

    # O(num_inputs) scalar normalization in plain JAX; result consumed from SMEM.
    w_norm = _normalize_weights(weights, norm_method)

    total = int(np.prod(shape))
    itemsize = np.dtype(dtype).itemsize

    # Lane-dense flat view.  Pad only when total is not a multiple of 128
    # (padding is an extra HBM copy per input; avoided in the common case).
    padded_total = total if total % LANES == 0 else _round_up(total, LANES)
    m_rows = padded_total // LANES
    tm, grid = _choose_row_tile(m_rows, num_streams=num_inputs + 1,
                                bytes_per_elem=itemsize)

    feats2d = []
    for f in features:
        flat = f.reshape(-1)
        if padded_total != total:
            flat = jnp.pad(flat, (0, padded_total - total))
        feats2d.append(flat.reshape(m_rows, LANES))   # contiguous reshape: no copy

    tile_spec = pl.BlockSpec((tm, LANES), lambda i: (i, 0))
    out2d = pl.pallas_call(
        _make_fusion_kernel(num_inputs),
        out_shape=jax.ShapeDtypeStruct((m_rows, LANES), dtype),
        grid=(grid,),
        in_specs=[pl.BlockSpec(memory_space=pltpu.MemorySpace.SMEM)]
                 + [tile_spec] * num_inputs,
        out_specs=tile_spec,
        compiler_params=pltpu.CompilerParams(
            dimension_semantics=("parallel",),
            vmem_limit_bytes=32 * 1024 * 1024),
    )(w_norm, *feats2d)

    out = out2d.reshape(-1)
    if padded_total != total:
        out = out[:total]
    return out.reshape(shape)


def reset_parameters(num_inputs, norm_method):
    """Matches Fusion.reset_parameters."""
    if norm_method == "softmax":
        return jnp.zeros((num_inputs,), jnp.float32)
    return jnp.ones((num_inputs,), jnp.float32)


# ----------------------------- pure-JAX reference ---------------------------

def fusion_reference(features, weights, norm_method="fast_normalize"):
    w = _normalize_weights(weights, norm_method)
    stacked = jnp.stack(features, axis=0)
    wb = w.reshape((len(features),) + (1,) * (stacked.ndim - 1))
    return jnp.sum(wb * stacked, axis=0)


# ----------------------------- main ------------------------------------------

if __name__ == "__main__":
    key = jax.random.PRNGKey(0)
    num_inputs = 3
    batch, c, h, w = 2, 4, 16, 16

    k_feat, k_w1, k_w2, k_feat2, k_feat3 = jax.random.split(key, 5)
    fkeys = jax.random.split(k_feat, num_inputs)
    features = [jax.random.normal(fk, (batch, c, h, w), jnp.float32) for fk in fkeys]

    # ---- fast_normalize path (default init = ones, perturbed to exercise relu)
    w_fast = reset_parameters(num_inputs, "fast_normalize") \
        + 0.5 * jax.random.normal(k_w1, (num_inputs,), jnp.float32)
    out_fast = jax.block_until_ready(
        fusion_forward(features, w_fast, norm_method="fast_normalize"))
    ref_fast = fusion_reference(features, w_fast, "fast_normalize")
    assert out_fast.shape == ref_fast.shape and out_fast.dtype == ref_fast.dtype
    np.testing.assert_allclose(np.asarray(out_fast), np.asarray(ref_fast),
                               rtol=1e-5, atol=1e-5)

    # ---- softmax path (default init = zeros, perturbed)
    w_soft = reset_parameters(num_inputs, "softmax") \
        + 0.3 * jax.random.normal(k_w2, (num_inputs,), jnp.float32)
    out_soft = jax.block_until_ready(
        fusion_forward(features, w_soft, norm_method="softmax"))
    ref_soft = fusion_reference(features, w_soft, "softmax")
    np.testing.assert_allclose(np.asarray(out_soft), np.asarray(ref_soft),
                               rtol=1e-5, atol=1e-5)

    # ---- odd shape that needs lane padding (exercises the pad fallback path)
    fkeys2 = jax.random.split(k_feat2, num_inputs)
    features_odd = [jax.random.normal(fk, (2, 3, 7, 9), jnp.float32) for fk in fkeys2]
    out_odd = jax.block_until_ready(
        fusion_forward(features_odd, w_fast, norm_method="fast_normalize"))
    ref_odd = fusion_reference(features_odd, w_fast, "fast_normalize")
    np.testing.assert_allclose(np.asarray(out_odd), np.asarray(ref_odd),
                               rtol=1e-5, atol=1e-5)

    # ---- slightly larger shape that exercises the multi-block (grid >= 2) path
    fkeys3 = jax.random.split(k_feat3, num_inputs)
    features_big = [jax.random.normal(fk, (2, 8, 32, 32), jnp.float32) for fk in fkeys3]
    out_big = jax.block_until_ready(
        fusion_forward(features_big, w_soft, norm_method="softmax"))
    ref_big = fusion_reference(features_big, w_soft, "softmax")
    np.testing.assert_allclose(np.asarray(out_big), np.asarray(ref_big),
                               rtol=1e-5, atol=1e-5)

    print("KERNEL_OK")
</pallas_src>

<mosaic_0001>
module attributes {stable_mosaic.version = 11 : i64} {
  func.func @kernel(%arg0: i32, %arg1: memref<3xf32, #tpu.memory_space<smem>>, %arg2: memref<8x128xf32, #tpu.memory_space<vmem>>, %arg3: memref<8x128xf32, #tpu.memory_space<vmem>>, %arg4: memref<8x128xf32, #tpu.memory_space<vmem>>, %arg5: memref<8x128xf32, #tpu.memory_space<vmem>>) attributes {dimension_semantics = [#tpu.dimension_semantics<parallel>], iteration_bounds = array<i64: 2>, scalar_prefetch = 0 : i64, scratch_operands = 0 : i64, tpu.core_type = #tpu.core_type<tc>, window_params = [{transform_indices = @transform_0, window_bounds = array<i64: 3>}, {transform_indices = @transform_1, window_bounds = array<i64: 8, 128>}, {transform_indices = @transform_2, window_bounds = array<i64: 8, 128>}, {transform_indices = @transform_3, window_bounds = array<i64: 8, 128>}, {transform_indices = @transform_4, window_bounds = array<i64: 8, 128>}]} {
    %c0 = arith.constant 0 : index
    %c0_0 = arith.constant 0 : index
    %0 = vector.load %arg2[%c0, %c0_0] : memref<8x128xf32, #tpu.memory_space<vmem>>, vector<8x128xf32>
    %c0_1 = arith.constant 0 : index
    %1 = memref.load %arg1[%c0_1] : memref<3xf32, #tpu.memory_space<smem>>
    %2 = vector.broadcast %1 : f32 to vector<8x128xf32>
    %3 = arith.mulf %0, %2 : vector<8x128xf32>
    %c0_2 = arith.constant 0 : index
    %c0_3 = arith.constant 0 : index
    %4 = vector.load %arg3[%c0_2, %c0_3] : memref<8x128xf32, #tpu.memory_space<vmem>>, vector<8x128xf32>
    %c1 = arith.constant 1 : index
    %5 = memref.load %arg1[%c1] : memref<3xf32, #tpu.memory_space<smem>>
    %6 = vector.broadcast %5 : f32 to vector<8x128xf32>
    %7 = arith.mulf %4, %6 : vector<8x128xf32>
    %8 = arith.addf %3, %7 : vector<8x128xf32>
    %c0_4 = arith.constant 0 : index
    %c0_5 = arith.constant 0 : index
    %9 = vector.load %arg4[%c0_4, %c0_5] : memref<8x128xf32, #tpu.memory_space<vmem>>, vector<8x128xf32>
    %c2 = arith.constant 2 : index
    %10 = memref.load %arg1[%c2] : memref<3xf32, #tpu.memory_space<smem>>
    %11 = vector.broadcast %10 : f32 to vector<8x128xf32>
    %12 = arith.mulf %9, %11 : vector<8x128xf32>
    %13 = arith.addf %8, %12 : vector<8x128xf32>
    %c0_6 = arith.constant 0 : index
    %c0_7 = arith.constant 0 : index
    %14 = vector.load %arg5[%c0_6, %c0_7] : memref<8x128xf32, #tpu.memory_space<vmem>>, vector<8x128xf32>
    tpu.vector_store %arg5[%c0_6, %c0_7], %13 {strides = array<i32>} : memref<8x128xf32, #tpu.memory_space<vmem>>, vector<8x128xf32>,
    return
  }
  func.func @transform_0(%arg0: i32) -> i32 {
    %c0_i32 = arith.constant 0 : i32
    %c0_i32_0 = arith.constant 0 : i32
    return %c0_i32 : i32
  }
  func.func @transform_1(%arg0: i32) -> (i32, i32) {
    %c0_i32 = arith.constant 0 : i32
    %c0_i32_0 = arith.constant 0 : i32
    return %arg0, %c0_i32 : i32, i32
  }
  func.func @transform_2(%arg0: i32) -> (i32, i32) {
    %c0_i32 = arith.constant 0 : i32
    %c0_i32_0 = arith.constant 0 : i32
    return %arg0, %c0_i32 : i32, i32
  }
  func.func @transform_3(%arg0: i32) -> (i32, i32) {
    %c0_i32 = arith.constant 0 : i32
    %c0_i32_0 = arith.constant 0 : i32
    return %arg0, %c0_i32 : i32, i32
  }
  func.func @transform_4(%arg0: i32) -> (i32, i32) {
    %c0_i32 = arith.constant 0 : i32
    %c0_i32_0 = arith.constant 0 : i32
    return %arg0, %c0_i32 : i32, i32
  }
}

</mosaic_0001>

<bundles_post_ra>
// kernel: tpu_custom_call.1
= control target key start
LH: loop header
LB: loop body
LE: loop exit
PB: predicated region body
PF: predicated region fallthrough
CT: control target
= control target key end

     0   :  { %s959_s0 = inlined_call_operand.hbm [shape: f32[3], index: 0, kind: input, shape index: {}]   ;;  %s960_s1 = inlined_call_operand.hbm [shape: f32[16,128], index: 1, kind: input, shape index: {}]   ;;  %s961_s2 = inlined_call_operand.hbm [shape: f32[16,128], index: 2, kind: input, shape index: {}]   ;;  %s962_s3 = inlined_call_operand.hbm [shape: f32[16,128], index: 3, kind: input, shape index: {}]   ;;  %s963_s4 = inlined_call_operand.hbm [shape: f32[16,128], index: 4, kind: output, shape index: {}]  }
   0x1   :  { %968 = sst [smem:[#allocation18_spill]] %s959_s0 }
   0x2   :  { %969 = sst [smem:[#allocation19_spill]] %s961_s2 }
   0x3   :  { %9 = vsyncpa [#allocation5], 0 }
   0x4   :  { %10 = vsyncpa [#allocation3], 0 }
   0x5   :  { %12 = vsyncpa [#allocation3 + $0x1], 0 }
   0x6   :  { %13 = vsyncpa [#allocation8], 0 }
   0x7   :  { %15 = vsyncpa [#allocation8 + $0x1], 0 }
   0x8   :  { %16 = vsyncpa [#allocation4], 0 }
   0x9   :  { %18 = vsyncpa [#allocation4 + $0x1], 0  ;;  %s756_s15 = smov 0   ;;  %s758_s16 = smov 0  }
   0xa   :  { %s760_s17 = smov 0   ;;  %s762_s18 = smov 0  }
   0xb LB: > { %970 = sst [smem:[#allocation15_spill]] %s728_s18  ;;  %s777_s19 = sadd.s32 1, %s728_s18   ;;  %s728_s18 = sphi %s762_s18, %s983_s18   ;;  %s724_s17 = sphi %s760_s17, %s987_s17   ;;  %s720_s16 = sphi %s758_s16, %s986_s16   ;;  %s716_s15 = sphi %s756_s15, %s985_s15  }
   0xc   : > { %971 = sst [smem:[#allocation16_spill]] %s777_s19  ;;  %s52_s20 = sadd.s32 1, %s724_s17 }
   0xd   : > { %s49_s21 = ssub.s32 %s728_s18, %s777_s19  ;;  %p59_p0 = scmp.ne.s32.totalorder %s724_s17, %s720_s16 }
   0xe   : > { %p50_p1 = scmp.eq.s32.totalorder %s49_s21, 0  ;;  %p60_p2 = scmp.eq.s32.totalorder %s728_s18, 0 }
   0xf   : > { %p513_p4 = scmp.lt.s32.totalorder %s728_s18, 2  ;;  %s964_s23 = sand.u32 1, %s724_s17  }
  0x10   : > { %s788_s22 = scalar_select %p50_p1, %s724_s17, %s52_s20  }
  0x11   : > { %p61_p5 = por %p60_p2, %p59_p0  ;;  %s796_s24 = sshll.u32 %s964_s23, 3 }
  0x12   : > { %972 = sst [smem:[#allocation17_spill]] %s788_s22  ;;  %s799_s25 = sshll.u32 %s728_s18, 3 }
  0x13   : > { %p801_p6 = pnand %p513_p4, %p61_p5  ;;  %s196_s27 = sand.u32 1, %s728_s18  }
  0x14   : > { %s974_s2 = sld [smem:[#allocation19_spill]]  ;;  %s200_s6 = scalar_lea.vmem [#allocation7], %s796_s24 }
  0x15   : > { %s208_s7 = sshll.u32 %s200_s6, 4  ;;  %s811_s8 = scalar_lea.sflag [#allocation8], %s196_s27  ;;  %s209_s7 = int_to_ptr.vmem [resolvable:$true] %s208_s7 }
  0x16   : > { %p553_p8 = pneg %p801_p6 }
  0x1a   : > { %s204_s30 = scalar_lea.hbm %s974_s2, %s799_s25  ;;  %s556_s13 = scalar_lea.hbm %s974_s2, 16 }
  0x1b   : > { %s206_s5 = sshll.u32 %s204_s30, 4  ;;  %s207_s5 = int_to_ptr.hbm [resolvable:$true] %s206_s5 }
  0x1c   : > { %s549_s9 = sshra.s32 %s207_s5, 4  ;;  %s550_s9 = int_to_ptr.hbm [resolvable:$true] %s549_s9 }
  0x1d   : > { %s551_s10 = scalar_lea.hbm %s550_s9, 8  ;;  %p557_p11 = scmp.lt.s32.totalorder %s550_s9, %s974_s2 }
  0x1e   : > { %p552_p7 = scmp.ne.s32.totalorder %s550_s9, %s551_s10  ;;  %p558_p12 = scmp.lt.s32.totalorder %s556_s13, %s551_s10 }
  0x20   : > { %p554_p9 = pnand %p553_p8, %p552_p7  ;;  %p559_p13 = por %p558_p12, %p557_p11 }
  0x22   : > { %p555_p10 = pneg %p554_p9 }
  0x24   : > { %p560_p1 = pnand %p559_p13, %p555_p10 }
  0x26   : > { %563 = shalt.err (!%p560_p1)
}
  0x27   : > { %504 = dma.hbm_to_vmem [thread:$0]  (!%p801_p6), %s207_s5, 128, %s209_s7, %s811_s8  }
  0x28   : > { %s828_s21 = sadd.s32 4294967295, %s728_s18   ;;  %s460_s27 = sadd.s32 4294967294, %s728_s18  }
  0x29   : > { %p65_p2 = scmp.ne.s32.totalorder %s720_s16, %s716_s15  ;;  %p66_p4 = scmp.eq.s32.totalorder %s828_s21, 0 }
  0x2a   : > { %p141_p5 = scmp.eq.s32.totalorder %s828_s21, 1  ;;  %p147_p7 = scmp.eq.s32.totalorder %s460_s27, 1 }
  0x2b   : > { %p837_p9 = por %p66_p4, %p65_p2  ;;  %p461_p10 = scmp.ge.s32.totalorder %s728_s18, 1 }
  0x2c   : > { %p845_p11 = por %p141_p5, %p59_p0  ;;  %p849_p12 = por %p147_p7, %p65_p2 }
  0x2d   : > { %p154_p13 = scmp.lt.s32.totalorder %s728_s18, 3  ;;  %s978_s0 = sld [smem:[#allocation18_spill]] }
  0x2e   : > { %s185_s12 = scalar_lea.hbm %s960_s1, %s799_s25  ;;  %s181_s14 = scalar_lea.vmem [#allocation6], %s796_s24 }
  0x2f   : > { %p857_p1 = pnand %p461_p10, %p154_p13  ;;  %s187_s13 = sshll.u32 %s185_s12, 4  ;;  %s188_s13 = int_to_ptr.hbm [resolvable:$true] %s187_s13 }
  0x30   : > { %s189_s20 = sshll.u32 %s181_s14, 4  ;;  %s223_s6 = scalar_lea.hbm %s962_s3, %s799_s25  ;;  %s190_s20 = int_to_ptr.vmem [resolvable:$true] %s189_s20 }
  0x31   : > { %p494_p0 = pneg %p857_p1  ;;  %s730_s23 = smov [#allocation2]  }
  0x32   : > { %s594_s22 = sshra.s32 %s188_s13, 4  ;;  %s601_s14 = scalar_lea.hbm %s960_s1, 16  ;;  %s595_s22 = int_to_ptr.hbm [resolvable:$true] %s594_s22 }
  0x33   : > { %s166_s7 = sshll.u32 %s978_s0, 4  ;;  %p495_p2 = pnand %p494_p0, %p66_p4  ;;  %s167_s7 = int_to_ptr.hbm [resolvable:$true] %s166_s7 }
  0x34   : > { %s980_s0 = sand.u32 1, %s724_s17   ;;  %s596_s10 = scalar_lea.hbm %s595_s22, 8 }
  0x35   : > { %497 = dma.hbm_to_smem (!%p495_p2), %s167_s7, 16, %s730_s23, [#allocation5]  }
  0x36   : > { %s178_s2 = scalar_lea.sflag [#allocation3], %s980_s0  ;;  %p597_p5 = scmp.ne.s32.totalorder %s595_s22, %s596_s10 }
  0x37   : > { %p602_p13 = scmp.lt.s32.totalorder %s595_s22, %s960_s1  ;;  %p603_p0 = scmp.lt.s32.totalorder %s601_s14, %s596_s10 }
  0x38   : > { %p599_p7 = pnand %p597_p5, %p553_p8 }
  0x39   : > { %p604_p2 = por %p603_p0, %p602_p13 }
  0x3a   : > { %p600_p10 = pneg %p599_p7 }
  0x3c   : > { %p605_p3 = pnand %p604_p2, %p600_p10 }
  0x3e   : > { %608 = shalt.err (!%p605_p3)
}
  0x3f   : > { %501 = dma.hbm_to_vmem [thread:$0]  (!%p801_p6), %s188_s13, 128, %s190_s20, %s178_s2  }
  0x40   : > { %s225_s0 = sshll.u32 %s223_s6, 4  ;;  %s219_s23 = scalar_lea.vmem [#allocation9], %s796_s24  ;;  %s226_s0 = int_to_ptr.hbm [resolvable:$true] %s225_s0 }
  0x41   : > { %s227_s25 = sshll.u32 %s219_s23, 4  ;;  %s624_s7 = sshra.s32 %s226_s0, 4  ;;  %s228_s25 = int_to_ptr.vmem [resolvable:$true] %s227_s25  ;;  %s625_s7 = int_to_ptr.hbm [resolvable:$true] %s624_s7 }
  0x42   : > { %s626_s27 = scalar_lea.hbm %s625_s7, 8  ;;  %s631_s22 = scalar_lea.hbm %s962_s3, 16 }
  0x43   : > { %p627_p5 = scmp.ne.s32.totalorder %s625_s7, %s626_s27  ;;  %p632_p3 = scmp.lt.s32.totalorder %s625_s7, %s962_s3 }
  0x44   : > { %p633_p10 = scmp.lt.s32.totalorder %s631_s22, %s626_s27 }
  0x45   : > { %p629_p7 = pnand %p627_p5, %p553_p8 }
  0x46   : > { %p634_p0 = por %p633_p10, %p632_p3 }
  0x47   : > { %p630_p13 = pneg %p629_p7 }
  0x49   : > { %p635_p2 = pnand %p634_p0, %p630_p13 }
  0x4b   : > { %638 = shalt.err (!%p635_p2)
}
  0x4c   : > { %507 = dma.hbm_to_vmem [thread:$0]  (!%p801_p6), %s226_s0, 128, %s228_s25, %s811_s8  }
  0x4d   : > { %236 = sbr.rel (%p857_p1) target bundleno = 109 (0x6d), region = 36 }
  0x52   : > { %699 = dma.done.wait (%p66_p4), [#allocation5], 16  }
  0x53   : > { %701 = vsyncadd (%p66_p4), [#allocation5], 4294967280  ;;  %s907_s2 = sand.u32 1, %s720_s16  }
  0x54   : > { %s910_s24 = sshll.u32 %s907_s2, 3  ;;  %s244_s26 = scalar_lea.sflag [#allocation3], %s907_s2 }
  0x55   : > { %s247_s8 = scalar_lea.vmem [#allocation6], %s910_s24 }
  0x56   : > { %703 = dma.done.wait (%p837_p9), %s244_s26, 128  }
  0x57   : > { %705 = vsyncadd (%p837_p9), %s244_s26, 4294967168  ;;  %s253_s9 = sand.u32 1, %s828_s21   ;;  %s257_s20 = scalar_lea.vmem [#allocation7], %s910_s24 }
  0x58   : > { %s254_s13 = scalar_lea.sflag [#allocation8], %s253_s9 }
  0x59   : > { %707 = dma.done.wait (%p837_p9), %s254_s13, 256  }
  0x5a   : > { %709 = vsyncadd (%p837_p9), %s254_s13, 4294967040  ;;  %s267_s6 = scalar_lea.vmem [#allocation9], %s910_s24 }
  0x5b   : > { %273 = sfence }
  0x5c   : > { %s305_s11 = sld [smem:[#allocation2]]  ;;  %s479_s0 = sshll.u32 %s828_s21, 3  ;;  %v304_v0 = vld [vmem:[%s247_s8] sm:$0xff]  ;;  %v308_v1 = vld [vmem:[%s257_s20] sm:$0xff] }
  0x5d   : > { %s476_s12 = sld [smem:[#allocation2 + $0x1]]  ;;  %v313_v3 = vld [vmem:[%s267_s6] sm:$0xff]  ;;  %s330_s7 = scalar_lea.hbm %s963_s4, %s479_s0 }
  0x5e   : > { %s477_s14 = sld [smem:[#allocation2 + $0x2]]  ;;  %s303_s28 = scalar_lea.vmem [#allocation10], %s910_s24 }
  0x5f   : > { %s332_s27 = sshll.u32 %s303_s28, 4  ;;  %s334_s18 = sshll.u32 %s330_s7, 4  ;;  %s333_s27 = int_to_ptr.vmem [resolvable:$true] %s332_s27  ;;  %s335_s18 = int_to_ptr.hbm [resolvable:$true] %s334_s18 }
  0x60   : > { %s320_s21 = scalar_lea.sflag [#allocation4], %s907_s2  ;;  %s668_s19 = sshra.s32 %s335_s18, 4  ;;  %s669_s19 = int_to_ptr.hbm [resolvable:$true] %s668_s19 }
  0x61   : > { %s670_s22 = scalar_lea.hbm %s669_s19, 8  ;;  %s674_s24 = scalar_lea.hbm %s963_s4, 16 }
  0x62   : > { %v306_v2 = vstv %s305_s11  ;;  %p671_p6 = scmp.ne.s32.totalorder %s669_s19, %s670_s22  ;;  %p675_p9 = scmp.lt.s32.totalorder %s669_s19, %s963_s4 }
  0x63   : > { %v307_v4 = vmul.f32 %v306_v2, %v304_v0  ;;  %v310_v5 = vstv %s476_s12  ;;  %p676_p1 = scmp.lt.s32.totalorder %s674_s24, %s670_s22 }
  0x64   : > { %v311_v6 = vmul.f32 %v310_v5, %v308_v1  ;;  %v315_v7 = vstv %s477_s14  ;;  %p672_p8 = pnand %p671_p6, %p845_p11 }
  0x65   : > { %v316_v8 = vmul.f32 %v315_v7, %v313_v3  ;;  %p677_p5 = por %p676_p1, %p675_p9 }
  0x66   : > { %v312_v9 = vadd.f32 %v311_v6, %v307_v4  ;;  %p673_p4 = pneg %p672_p8 }
  0x68   : > { %v317_v10 = vadd.f32 %v316_v8, %v312_v9  ;;  %p678_p7 = pnand %p677_p5, %p673_p4 }
  0x6a   : > { %318 = vst [vmem:[%s303_s28] sm:$0xff] %v317_v10 }
  0x6b   : > { %681 = shalt.err (!%p678_p7)
}
  0x6c   : > { %492 = dma.vmem_to_hbm [thread:$0]  (%p845_p11), %s333_s27, 128, %s335_s18, %s320_s21  }
  0x6d PF: > { %s981_s2 = sld [smem:[#allocation15_spill]]  ;;  %s346_s9 = sand.u32 1, %s716_s15  }
  0x6e   : > { %s347_s13 = scalar_lea.sflag [#allocation4], %s346_s9 }
  0x73   : > { %p982_p13 = scmp.ge.s32.totalorder %s981_s2, 2 }
  0x75   : > { %p509_p3 = pnand %p982_p13, %p849_p12 }
  0x77   : > { %p510_p10 = pneg %p509_p3 }
  0x79   : > { %711 = dma.done.wait (%p510_p10), %s347_s13, 128  }
  0x7a   : > { %713 = vsyncadd (%p510_p10), %s347_s13, 4294967168  ;;  %s983_s18 = sld [smem:[#allocation16_spill]]  ;;  %s985_s15 = smov %s720_s16 }
  0x7b   : > { %s984_s20 = sld [smem:[#allocation17_spill]]  ;;  %s986_s16 = smov %s724_s17 }
  0x80   : > { %p21_p0 = scmp.ge.s32.totalorder %s983_s18, 4  }
  0x81   : > { %s987_s17 = smov %s984_s20 }
  0x82   :  { %23 = sbr.rel (!%p21_p0) target bundleno = 11 (0xb), region = 110 }
  0x87   :  { %353 = vsyncpa [#allocation3], 1 }
  0x88   :  { %355 = vsyncpa [#allocation3 + $0x1], 1 }
  0x89   :  { %356 = vsyncpa [#allocation8], 1 }
  0x8a   :  { %358 = vsyncpa [#allocation8 + $0x1], 1 }
  0x8b   :  { %359 = vsyncpa [#allocation4], 1 }
  0x8c   :  { %361 = vsyncpa [#allocation4 + $0x1], 1 }
  0x8d   :  { %362 = vsyncpa [#allocation5], 1 }
  0x8e   :  { %364 = vsyncpa [#allocation5 + $0x1], 1 }

</bundles_post_ra>
